<compile_context>
chip_gen: v6e
topology: v6e:2x2x1
jax: 0.10.0
libtpu: 0.0.40
codegen_flags: <defaults>
</compile_context>

<pallas_src>
import jax
import jax.numpy as jnp
from jax import lax
from jax.experimental import pallas as pl
from jax.experimental.pallas import tpu as pltpu


def _round_up(n, m):
    return ((n + m - 1) // m) * m


# --------------------------------------------------------------------------
# Pallas kernel: fused gather + 3-layer MLP (512 -> 128 -> 64 -> 1), one tile
# --------------------------------------------------------------------------
def fused_mlp_kernel(uid_ref, mid_ref, u_tbl_ref, m_tbl_ref,
                     w1_ref, b1_ref, w2_ref, b2_ref, w3_ref, b3_ref, o_ref):
    tb = uid_ref.shape[0]
    nu, e = u_tbl_ref.shape
    nm = m_tbl_ref.shape[0]

    # --- fused embedding gather --------------------------------------------
    # One-hot rows (exact 0/1 in bf16) x VMEM-resident table on the MXU.
    # The selected rows are exact bf16 table rows, so the f32->bf16 re-cast
    # below is lossless.
    u_oh = jnp.where(
        uid_ref[...] == lax.broadcasted_iota(jnp.int32, (tb, nu), 1),
        1.0, 0.0).astype(jnp.bfloat16)                                 # [TB, NU]
    m_oh = jnp.where(
        mid_ref[...] == lax.broadcasted_iota(jnp.int32, (tb, nm), 1),
        1.0, 0.0).astype(jnp.bfloat16)                                 # [TB, NM]
    u = jnp.dot(u_oh, u_tbl_ref[...],
                preferred_element_type=jnp.float32).astype(jnp.bfloat16)  # [TB, E]
    m = jnp.dot(m_oh, m_tbl_ref[...],
                preferred_element_type=jnp.float32).astype(jnp.bfloat16)  # [TB, E]

    # --- layer 1: concat folded in by splitting W1 into user/movie halves ---
    h1 = jnp.dot(u, w1_ref[:e, :], preferred_element_type=jnp.float32)
    h1 = h1 + jnp.dot(m, w1_ref[e:, :], preferred_element_type=jnp.float32)
    h1 = jnp.maximum(h1 + b1_ref[...], 0.0)                            # [TB, H1] f32
    # TODO(synk): nn.Dropout(p=0.2) is identity in eval mode; omitted here.

    # --- layer 2: bf16 MXU matmul, f32 accumulate, bias + ReLU --------------
    h2 = jnp.dot(h1.astype(jnp.bfloat16), w2_ref[...],
                 preferred_element_type=jnp.float32)                    # [TB, H2] f32
    h2 = jnp.maximum(h2 + b2_ref[...], 0.0)

    # --- layer 3 (H2 -> 1): VPU multiply + lane reduce; scalar bias in SMEM --
    out = jnp.sum(h2 * w3_ref[...], axis=-1, keepdims=True)            # [TB, 1] f32
    o_ref[...] = out + b3_ref[0, 0]


# --------------------------------------------------------------------------
# Wrapper: ids in, ratings out (gather/concat/MLP all inside the kernel)
# --------------------------------------------------------------------------
def mlp_recommender_forward(params, user_ids, movie_ids, *, tile_b=4096):
    B = user_ids.shape[0]
    uid = user_ids.astype(jnp.int32).reshape(B, 1)
    mid = movie_ids.astype(jnp.int32).reshape(B, 1)

    # Keep tile_b a multiple of 128 rows and small enough that batches still
    # split into >=2 grid tiles (so both v7x TensorCores get work); floor 128.
    tile_b = max(128, _round_up(min(tile_b, pl.cdiv(B, 2)), 128))
    B_pad = _round_up(B, tile_b)
    if B_pad != B:
        # Only the 4-byte ids are padded (row 0 is a valid table index); the
        # padded rows' outputs are discarded by the [:B] slice below.  The
        # [B, 512] activation is never padded - or even materialized in HBM.
        uid = jnp.pad(uid, ((0, B_pad - B), (0, 0)))
        mid = jnp.pad(mid, ((0, B_pad - B), (0, 0)))
    n_tiles = B_pad // tile_b

    u_tbl = params["user_embed"]
    m_tbl = params["movie_embed"]
    w1, b1 = params["w1"], params["b1"]
    w2, b2 = params["w2"], params["b2"]
    w3, b3 = params["w3"], params["b3"]

    NU, E = u_tbl.shape
    NM = m_tbl.shape[0]
    in_dim, H1 = w1.shape
    H2 = w2.shape[1]

    cost = pl.CostEstimate(
        flops=2 * B_pad * (NU * E + NM * E + in_dim * H1 + H1 * H2 + H2),
        transcendentals=0,
        bytes_accessed=(
            2 * B_pad * 4                                  # id streams
            + (u_tbl.size + m_tbl.size + w1.size + w2.size) * 2   # bf16, read once
            + (b1.size + b2.size + w3.size + b3.size) * 4
            + B_pad * 4                                    # output column
        ),
    )

    out = pl.pallas_call(
        fused_mlp_kernel,
        out_shape=jax.ShapeDtypeStruct((B_pad, 1), jnp.float32),
        grid=(n_tiles,),
        in_specs=[
            pl.BlockSpec((tile_b, 1), lambda i: (i, 0)),        # user ids (pipelined)
            pl.BlockSpec((tile_b, 1), lambda i: (i, 0)),        # movie ids (pipelined)
            pl.BlockSpec((NU, E), lambda i: (0, 0)),            # user table (VMEM resident)
            pl.BlockSpec((NM, E), lambda i: (0, 0)),            # movie table (VMEM resident)
            pl.BlockSpec((in_dim, H1), lambda i: (0, 0)),       # W1
            pl.BlockSpec((1, H1), lambda i: (0, 0)),            # b1
            pl.BlockSpec((H1, H2), lambda i: (0, 0)),           # W2
            pl.BlockSpec((1, H2), lambda i: (0, 0)),            # b2
            pl.BlockSpec((1, H2), lambda i: (0, 0)),            # w3 row
            pl.BlockSpec(memory_space=pltpu.MemorySpace.SMEM),  # b3 scalar
        ],
        out_specs=pl.BlockSpec((tile_b, 1), lambda i: (i, 0)),
        compiler_params=pltpu.CompilerParams(
            dimension_semantics=("parallel",),
            vmem_limit_bytes=48 << 20,      # room for 4096-row tiles on all gens
        ),
        cost_estimate=cost,
    )(uid, mid, u_tbl, m_tbl, w1, b1, w2, b2, w3, b3)

    return out[:B, 0]                                       # == .squeeze()


# --------------------------------------------------------------------------
# Parameter init (matches the PyTorch module's shapes; bf16 tables/weights)
# --------------------------------------------------------------------------
def init_params(key, num_users, num_movies, embed_dim, hidden_dims):
    ks = jax.random.split(key, 8)
    h1, h2 = hidden_dims
    in_dim = embed_dim * 2

    def lin_w(kw, shape, fan_in, dtype):
        bound = 1.0 / jnp.sqrt(fan_in)
        return jax.random.uniform(kw, shape, jnp.float32, -bound, bound).astype(dtype)

    def lin_b(kb, fan_in, fan_out):
        bound = 1.0 / jnp.sqrt(fan_in)
        return jax.random.uniform(kb, (1, fan_out), jnp.float32, -bound, bound)

    return {
        # Embedding tables in bf16: halves the bytes of the gathered rows.
        # TODO(synk): optional fp8 (v7x) / int8+scale (v5e/v6e) storage for a
        # further ~2x on the gather stream once accuracy is validated.
        "user_embed": jax.random.normal(
            ks[0], (num_users, embed_dim), jnp.float32).astype(jnp.bfloat16),
        "movie_embed": jax.random.normal(
            ks[1], (num_movies, embed_dim), jnp.float32).astype(jnp.bfloat16),
        # Linear weights stored [in, out] (transposed vs. nn.Linear.weight).
        "w1": lin_w(ks[2], (in_dim, h1), in_dim, jnp.bfloat16),
        "b1": lin_b(ks[3], in_dim, h1),
        "w2": lin_w(ks[4], (h1, h2), h1, jnp.bfloat16),
        "b2": lin_b(ks[5], h1, h2),
        # Final layer kept as a [1, h2] f32 row (PyTorch [out, in] layout) for
        # the in-kernel VPU multiply-reduce; its bias is a [1,1] f32 in SMEM.
        "w3": lin_w(ks[6], (1, h2), h2, jnp.float32),
        "b3": lin_b(ks[7], h2, 1),
    }


# --------------------------------------------------------------------------
# Reference (pure JAX, mirrors the kernel's bf16 casts) for sanity checking
# --------------------------------------------------------------------------
def reference_forward(params, user_ids, movie_ids):
    u = jnp.take(params["user_embed"], user_ids, axis=0).astype(jnp.float32)
    m = jnp.take(params["movie_embed"], movie_ids, axis=0).astype(jnp.float32)
    x = jnp.concatenate([u, m], axis=1)
    h1 = jnp.maximum(x @ params["w1"].astype(jnp.float32) + params["b1"], 0.0)
    h1 = h1.astype(jnp.bfloat16).astype(jnp.float32)
    h2 = jnp.maximum(h1 @ params["w2"].astype(jnp.float32) + params["b2"], 0.0)
    return jnp.sum(h2 * params["w3"], axis=-1) + params["b3"][0, 0]


if __name__ == "__main__":
    # Small deterministic config consistent with the module.
    num_users = 64
    num_movies = 64
    embed_dim = 256
    hidden_dims = [128, 64]

    key = jax.random.PRNGKey(0)
    k_params, k_u, k_m = jax.random.split(key, 3)
    params = init_params(k_params, num_users, num_movies, embed_dim, hidden_dims)

    # --- small single-tile case --------------------------------------------
    batch = 8
    user_ids = jax.random.randint(k_u, (batch,), 0, num_users, dtype=jnp.int32)
    movie_ids = jax.random.randint(k_m, (batch,), 0, num_movies, dtype=jnp.int32)

    out = jax.block_until_ready(mlp_recommender_forward(params, user_ids, movie_ids))
    ref = reference_forward(params, user_ids, movie_ids)
    assert out.shape == (batch,), out.shape
    assert jnp.allclose(out, ref, atol=1e-2, rtol=1e-2), (out, ref)

    # --- multi-tile + padded-batch case (grid > 1, resident tables/weights) --
    batch2 = 300
    k_u2, k_m2 = jax.random.split(jax.random.PRNGKey(1), 2)
    uid2 = jax.random.randint(k_u2, (batch2,), 0, num_users, dtype=jnp.int32)
    mid2 = jax.random.randint(k_m2, (batch2,), 0, num_movies, dtype=jnp.int32)

    out2 = jax.block_until_ready(
        mlp_recommender_forward(params, uid2, mid2, tile_b=128))
    ref2 = reference_forward(params, uid2, mid2)
    assert out2.shape == (batch2,), out2.shape
    assert jnp.allclose(out2, ref2, atol=1e-2, rtol=1e-2), (out2, ref2)

    print("KERNEL_OK")
</pallas_src>

<mosaic_0001>
module attributes {stable_mosaic.version = 11 : i64} {
  func.func @fused_mlp_kernel(%arg0: i32, %arg1: memref<128x1xi32, #tpu.memory_space<vmem>>, %arg2: memref<128x1xi32, #tpu.memory_space<vmem>>, %arg3: memref<64x256xbf16, #tpu.memory_space<vmem>>, %arg4: memref<64x256xbf16, #tpu.memory_space<vmem>>, %arg5: memref<512x128xbf16, #tpu.memory_space<vmem>>, %arg6: memref<1x128xf32, #tpu.memory_space<vmem>>, %arg7: memref<128x64xbf16, #tpu.memory_space<vmem>>, %arg8: memref<1x64xf32, #tpu.memory_space<vmem>>, %arg9: memref<1x64xf32, #tpu.memory_space<vmem>>, %arg10: memref<1x1xf32, #tpu.memory_space<smem>>, %arg11: memref<128x1xf32, #tpu.memory_space<vmem>>) attributes {dimension_semantics = [#tpu.dimension_semantics<parallel>], iteration_bounds = array<i64: 1>, scalar_prefetch = 0 : i64, scratch_operands = 0 : i64, tpu.core_type = #tpu.core_type<tc>, window_params = [{transform_indices = @transform_0, window_bounds = array<i64: 128, 1>}, {transform_indices = @transform_1, window_bounds = array<i64: 128, 1>}, {pipeline_mode = #tpu.pipeline_mode<synchronous>, transform_indices = @transform_2, window_bounds = array<i64: 64, 256>}, {pipeline_mode = #tpu.pipeline_mode<synchronous>, transform_indices = @transform_3, window_bounds = array<i64: 64, 256>}, {pipeline_mode = #tpu.pipeline_mode<synchronous>, transform_indices = @transform_4, window_bounds = array<i64: 512, 128>}, {pipeline_mode = #tpu.pipeline_mode<synchronous>, transform_indices = @transform_5, window_bounds = array<i64: 1, 128>}, {pipeline_mode = #tpu.pipeline_mode<synchronous>, transform_indices = @transform_6, window_bounds = array<i64: 128, 64>}, {pipeline_mode = #tpu.pipeline_mode<synchronous>, transform_indices = @transform_7, window_bounds = array<i64: 1, 64>}, {pipeline_mode = #tpu.pipeline_mode<synchronous>, transform_indices = @transform_8, window_bounds = array<i64: 1, 64>}, {transform_indices = @transform_9, window_bounds = array<i64: 1, 1>}, {transform_indices = @transform_10, window_bounds = array<i64: 128, 1>}]} {
    %c0 = arith.constant 0 : index
    %c0_0 = arith.constant 0 : index
    %0 = vector.load %arg1[%c0, %c0_0] : memref<128x1xi32, #tpu.memory_space<vmem>>, vector<128x1xi32>
    %1 = tpu.iota {dimensions = array<i32: 1>} : vector<128x64xi32>
    %2 = vector.broadcast %0 : vector<128x1xi32> to vector<128x64xi32>
    %3 = arith.cmpi eq, %2, %1 : vector<128x64xi32>
    %cst = arith.constant 1.000000e+00 : f32
    %cst_1 = arith.constant 0.000000e+00 : f32
    %4 = vector.broadcast %cst : f32 to vector<128x64xf32>
    %5 = vector.broadcast %cst_1 : f32 to vector<128x64xf32>
    %6 = arith.select %3, %4, %5 : vector<128x64xi1>, vector<128x64xf32>
    %7 = arith.truncf %6 : vector<128x64xf32> to vector<128x64xbf16>
    %c0_2 = arith.constant 0 : index
    %c0_3 = arith.constant 0 : index
    %8 = vector.load %arg2[%c0_2, %c0_3] : memref<128x1xi32, #tpu.memory_space<vmem>>, vector<128x1xi32>
    %9 = tpu.iota {dimensions = array<i32: 1>} : vector<128x64xi32>
    %10 = vector.broadcast %8 : vector<128x1xi32> to vector<128x64xi32>
    %11 = arith.cmpi eq, %10, %9 : vector<128x64xi32>
    %cst_4 = arith.constant 1.000000e+00 : f32
    %cst_5 = arith.constant 0.000000e+00 : f32
    %12 = vector.broadcast %cst_4 : f32 to vector<128x64xf32>
    %13 = vector.broadcast %cst_5 : f32 to vector<128x64xf32>
    %14 = arith.select %11, %12, %13 : vector<128x64xi1>, vector<128x64xf32>
    %15 = arith.truncf %14 : vector<128x64xf32> to vector<128x64xbf16>
    %c0_6 = arith.constant 0 : index
    %c0_7 = arith.constant 0 : index
    %16 = vector.load %arg3[%c0_6, %c0_7] : memref<64x256xbf16, #tpu.memory_space<vmem>>, vector<64x256xbf16>
    %cst_8 = arith.constant dense<0.000000e+00> : vector<128x256xf32>
    %17 = tpu.matmul %7, %16, %cst_8 {dimension_numbers = #tpu.dot_dimension_numbers<[1], [0], [0], [1], [0, 0, 1, 1], [], []>} : vector<128x64xbf16>, vector<64x256xbf16>, vector<128x256xf32> -> vector<128x256xf32>
    %18 = arith.truncf %17 : vector<128x256xf32> to vector<128x256xbf16>
    %c0_9 = arith.constant 0 : index
    %c0_10 = arith.constant 0 : index
    %19 = vector.load %arg4[%c0_9, %c0_10] : memref<64x256xbf16, #tpu.memory_space<vmem>>, vector<64x256xbf16>
    %cst_11 = arith.constant dense<0.000000e+00> : vector<128x256xf32>
    %20 = tpu.matmul %15, %19, %cst_11 {dimension_numbers = #tpu.dot_dimension_numbers<[1], [0], [0], [1], [0, 0, 1, 1], [], []>} : vector<128x64xbf16>, vector<64x256xbf16>, vector<128x256xf32> -> vector<128x256xf32>
    %21 = arith.truncf %20 : vector<128x256xf32> to vector<128x256xbf16>
    %c0_12 = arith.constant 0 : index
    %c0_13 = arith.constant 0 : index
    %22 = vector.load %arg5[%c0_12, %c0_13] : memref<512x128xbf16, #tpu.memory_space<vmem>>, vector<256x128xbf16>
    %cst_14 = arith.constant dense<0.000000e+00> : vector<128x128xf32>
    %23 = tpu.matmul %18, %22, %cst_14 {dimension_numbers = #tpu.dot_dimension_numbers<[1], [0], [0], [1], [0, 0, 1, 1], [], []>} : vector<128x256xbf16>, vector<256x128xbf16>, vector<128x128xf32> -> vector<128x128xf32>
    %c256 = arith.constant 256 : index
    %c0_15 = arith.constant 0 : index
    %24 = vector.load %arg5[%c256, %c0_15] : memref<512x128xbf16, #tpu.memory_space<vmem>>, vector<256x128xbf16>
    %cst_16 = arith.constant dense<0.000000e+00> : vector<128x128xf32>
    %25 = tpu.matmul %21, %24, %cst_16 {dimension_numbers = #tpu.dot_dimension_numbers<[1], [0], [0], [1], [0, 0, 1, 1], [], []>} : vector<128x256xbf16>, vector<256x128xbf16>, vector<128x128xf32> -> vector<128x128xf32>
    %26 = arith.addf %23, %25 : vector<128x128xf32>
    %c0_17 = arith.constant 0 : index
    %c0_18 = arith.constant 0 : index
    %27 = vector.load %arg6[%c0_17, %c0_18] : memref<1x128xf32, #tpu.memory_space<vmem>>, vector<1x128xf32>
    %28 = vector.broadcast %27 : vector<1x128xf32> to vector<128x128xf32>
    %29 = arith.addf %26, %28 : vector<128x128xf32>
    %cst_19 = arith.constant 0.000000e+00 : f32
    %30 = vector.broadcast %cst_19 : f32 to vector<128x128xf32>
    %31 = arith.maximumf %29, %30 : vector<128x128xf32>
    %32 = arith.truncf %31 : vector<128x128xf32> to vector<128x128xbf16>
    %c0_20 = arith.constant 0 : index
    %c0_21 = arith.constant 0 : index
    %33 = vector.load %arg7[%c0_20, %c0_21] : memref<128x64xbf16, #tpu.memory_space<vmem>>, vector<128x64xbf16>
    %cst_22 = arith.constant dense<0.000000e+00> : vector<128x64xf32>
    %34 = tpu.matmul %32, %33, %cst_22 {dimension_numbers = #tpu.dot_dimension_numbers<[1], [0], [0], [1], [0, 0, 1, 1], [], []>} : vector<128x128xbf16>, vector<128x64xbf16>, vector<128x64xf32> -> vector<128x64xf32>
    %c0_23 = arith.constant 0 : index
    %c0_24 = arith.constant 0 : index
    %35 = vector.load %arg8[%c0_23, %c0_24] : memref<1x64xf32, #tpu.memory_space<vmem>>, vector<1x64xf32>
    %36 = vector.broadcast %35 : vector<1x64xf32> to vector<128x64xf32>
    %37 = arith.addf %34, %36 : vector<128x64xf32>
    %cst_25 = arith.constant 0.000000e+00 : f32
    %38 = vector.broadcast %cst_25 : f32 to vector<128x64xf32>
    %39 = arith.maximumf %37, %38 : vector<128x64xf32>
    %c0_26 = arith.constant 0 : index
    %c0_27 = arith.constant 0 : index
    %40 = vector.load %arg9[%c0_26, %c0_27] : memref<1x64xf32, #tpu.memory_space<vmem>>, vector<1x64xf32>
    %41 = vector.broadcast %40 : vector<1x64xf32> to vector<128x64xf32>
    %42 = arith.mulf %39, %41 : vector<128x64xf32>
    %cst_28 = arith.constant dense<0.000000e+00> : vector<128xf32>
    %43 = vector.multi_reduction <add>, %42, %cst_28 [1] : vector<128x64xf32> to vector<128xf32>
    %44 = vector.shape_cast %43 : vector<128xf32> to vector<128x1xf32>
    %c0_29 = arith.constant 0 : index
    %c0_30 = arith.constant 0 : index
    %45 = memref.load %arg10[%c0_29, %c0_30] : memref<1x1xf32, #tpu.memory_space<smem>>
    %46 = vector.broadcast %45 : f32 to vector<128x1xf32>
    %47 = arith.addf %44, %46 : vector<128x1xf32>
    %c0_31 = arith.constant 0 : index
    %c0_32 = arith.constant 0 : index
    %48 = vector.load %arg11[%c0_31, %c0_32] : memref<128x1xf32, #tpu.memory_space<vmem>>, vector<128x1xf32>
    tpu.vector_store %arg11[%c0_31, %c0_32], %47 {strides = array<i32>} : memref<128x1xf32, #tpu.memory_space<vmem>>, vector<128x1xf32>,
    return
  }
  func.func @transform_0(%arg0: i32) -> (i32, i32) {
    %c0_i32 = arith.constant 0 : i32
    %c0_i32_0 = arith.constant 0 : i32
    return %arg0, %c0_i32 : i32, i32
  }
  func.func @transform_1(%arg0: i32) -> (i32, i32) {
    %c0_i32 = arith.constant 0 : i32
    %c0_i32_0 = arith.constant 0 : i32
    return %arg0, %c0_i32 : i32, i32
  }
  func.func @transform_2(%arg0: i32) -> (i32, i32) {
    %c0_i32 = arith.constant 0 : i32
    %c0_i32_0 = arith.constant 0 : i32
    %c0_i32_1 = arith.constant 0 : i32
    return %c0_i32, %c0_i32_0 : i32, i32
  }
  func.func @transform_3(%arg0: i32) -> (i32, i32) {
    %c0_i32 = arith.constant 0 : i32
    %c0_i32_0 = arith.constant 0 : i32
    %c0_i32_1 = arith.constant 0 : i32
    return %c0_i32, %c0_i32_0 : i32, i32
  }
  func.func @transform_4(%arg0: i32) -> (i32, i32) {
    %c0_i32 = arith.constant 0 : i32
    %c0_i32_0 = arith.constant 0 : i32
    %c0_i32_1 = arith.constant 0 : i32
    return %c0_i32, %c0_i32_0 : i32, i32
  }
  func.func @transform_5(%arg0: i32) -> (i32, i32) {
    %c0_i32 = arith.constant 0 : i32
    %c0_i32_0 = arith.constant 0 : i32
    %c0_i32_1 = arith.constant 0 : i32
    return %c0_i32, %c0_i32_0 : i32, i32
  }
  func.func @transform_6(%arg0: i32) -> (i32, i32) {
    %c0_i32 = arith.constant 0 : i32
    %c0_i32_0 = arith.constant 0 : i32
    %c0_i32_1 = arith.constant 0 : i32
    return %c0_i32, %c0_i32_0 : i32, i32
  }
  func.func @transform_7(%arg0: i32) -> (i32, i32) {
    %c0_i32 = arith.constant 0 : i32
    %c0_i32_0 = arith.constant 0 : i32
    %c0_i32_1 = arith.constant 0 : i32
    return %c0_i32, %c0_i32_0 : i32, i32
  }
  func.func @transform_8(%arg0: i32) -> (i32, i32) {
    %c0_i32 = arith.constant 0 : i32
    %c0_i32_0 = arith.constant 0 : i32
    %c0_i32_1 = arith.constant 0 : i32
    return %c0_i32, %c0_i32_0 : i32, i32
  }
  func.func @transform_9(%arg0: i32) -> (i32, i32) {
    %c0_i32 = arith.constant 0 : i32
    %c0_i32_0 = arith.constant 0 : i32
    %c0_i32_1 = arith.constant 0 : i32
    return %c0_i32, %c0_i32_0 : i32, i32
  }
  func.func @transform_10(%arg0: i32) -> (i32, i32) {
    %c0_i32 = arith.constant 0 : i32
    %c0_i32_0 = arith.constant 0 : i32
    return %arg0, %c0_i32 : i32, i32
  }
}

</mosaic_0001>

<bundles_post_ra>
// kernel: tpu_custom_call.1
= control target key start
LH: loop header
LB: loop body
LE: loop exit
PB: predicated region body
PF: predicated region fallthrough
CT: control target
= control target key end

     0   :  { %16 = vsyncpa [#allocation4], 0  ;;  %s1808_s13 = smov [#allocation3]   ;;  %s2381_s0 = inlined_call_operand.vmem [shape: s32[128,1], index: 0, kind: input, shape index: {}]   ;;  %s2382_s1 = inlined_call_operand.vmem [shape: s32[128,1], index: 1, kind: input, shape index: {}]   ;;  %s2383_s2 = inlined_call_operand.vmem [shape: bf16[64,256], index: 2, kind: input, shape index: {}]   ;;  %s2384_s3 = inlined_call_operand.hbm [shape: bf16[64,256], index: 3, kind: input, shape index: {}]   ;;  %s2385_s4 = inlined_call_operand.vmem [shape: bf16[512,128], index: 4, kind: input, shape index: {}]   ;;  %s2386_s5 = inlined_call_operand.vmem [shape: f32[1,128], index: 5, kind: input, shape index: {}]   ;;  %s2387_s6 = inlined_call_operand.vmem [shape: bf16[128,64], index: 6, kind: input, shape index: {}]   ;;  %s2388_s7 = inlined_call_operand.vmem [shape: f32[1,64], index: 7, kind: input, shape index: {}]   ;;  %s2389_s8 = inlined_call_operand.vmem [shape: f32[1,64], index: 8, kind: input, shape index: {}]   ;;  %s2390_s9 = inlined_call_operand.<no memory space> [shape: f32[1,1], index: 9, kind: input, shape index: {}]   ;;  %s2391_s10 = inlined_call_operand.vmem [shape: f32[128,1], index: 10, kind: output, shape index: {}]  }
   0x1   :  { %s28_s14 = sshll.u32 %s1808_s13, 4  ;;  %s29_s14 = int_to_ptr.vmem [resolvable:$true] %s28_s14 }
   0x2   :  { %s1794_s15 = scalar_lea.vmem %s29_s14, 1024  ;;  %p1799_p1 = scmp.lt.s32.totalorder %s29_s14, %s29_s14 }
   0x3   :  { %p1795_p0 = scmp.ne.s32.totalorder %s29_s14, %s1794_s15  ;;  %p1800_p2 = scmp.lt.s32.totalorder %s1794_s15, %s1794_s15 }
   0x5   :  { %p1801_p3 = por %p1800_p2, %p1799_p1 }
   0x7   :  { %p1802_p4 = pnand %p1801_p3, %p1795_p0 }
   0x9   :  { %1805 = shalt.err (!%p1802_p4)
}
   0xa   :  { %s1809_s16 = smov 128   ;;  %s1810_s17 = smov 8  }
   0xb   :  { %34 = dma.hbm_to_vmem [thread:$0]  %s2384_s3, 1024, %s29_s14, [#allocation4], %s1809_s16, %s1809_s16, %s1810_s17  }
   0xc   :  { %1806 = dma.done.wait [#allocation4], 1024  }
   0xd   :  { %1807 = vsyncadd [#allocation4], 4294966272  ;;  %v1811_v0 = vmov 0   ;;  %v65_v1 = vld [vmem:[%s2381_s0 + $0x70] sm:$0xff]  ;;  %v63_v2 = vld [vmem:[%s2381_s0 + $0x60] sm:$0xff]  ;;  %v67_v43 = vlaneseq  ;;  %v1812_v49 = vmov 0.0  }
   0xe   :  { %1721 = vset.pattern.permute.xlu1 %v1811_v0  ;;  %1720 = vset.pattern.permute.xlu0 %v1811_v0  ;;  %v66_v3 = vld [vmem:[%s2381_s0 + $0x78] sm:$0xff]  ;;  %v64_v4 = vld [vmem:[%s2381_s0 + $0x68] sm:$0xff]  ;;  %v51_v6 = vld [vmem:[%s2381_s0] sm:$0xff]  ;;  %vm309_vm2 = vcmask 523264  }
   0xf   :  { %426 = vmatprep.mubr.bf16.mxu1 %v1811_v0  ;;  %366 = vmatprep.mubr.bf16.mxu0 %v1811_v0  ;;  %v52_v5 = vld [vmem:[%s2381_s0 + $0x8] sm:$0xff]  ;;  %v157_v8 = vld [vmem:[%s2382_s1] sm:$0xff]  ;;  %v1722_v9 = vld [vmem:[%s2383_s2 + $0x34] ss:$8 sps:$4 sm:$0xff]   ;;  %v1998_v44 = vand.u32 127, %v67_v43 }
  0x10   :  { %112 = vperm.xlu1 %1721, %v65_v1   ;;  %106 = vperm.xlu0 %1720, %v63_v2   ;;  %v158_v7 = vld [vmem:[%s2382_s1 + $0x8] sm:$0xff]  ;;  %v1724_v10 = vld [vmem:[%s2383_s2 + $0x30] ss:$8 sps:$4 sm:$0xff]   ;;  %v1728_v15 = vld [vmem:[%s2383_s2 + $0x14] ss:$8 sps:$4 sm:$0xff]  }
  0x11   :  { %v1725_v11 = vld [vmem:[%s2383_s2 + $0x24] ss:$8 sps:$4 sm:$0xff]   ;;  %v54_v12 = vld [vmem:[%s2381_s0 + $0x18] sm:$0xff]  ;;  %v53_v13 = vld [vmem:[%s2381_s0 + $0x10] sm:$0xff]  ;;  %1707 = vmatprep.subr.bf16.mxu1 %v1722_v9  ;;  %342 = vmatprep.subr.bf16.mxu0 %v1722_v9 }
  0x12   :  { %1711 = vmatpush1.bf16.msra.mxu1 %v1724_v10  ;;  %v1727_v14 = vld [vmem:[%s2383_s2 + $0x20] ss:$8 sps:$4 sm:$0xff]   ;;  %343 = vmatpush1.bf16.msra.mxu0 %v1724_v10  ;;  %v160_v16 = vld [vmem:[%s2382_s1 + $0x18] sm:$0xff]  ;;  %v159_v17 = vld [vmem:[%s2382_s1 + $0x10] sm:$0xff] }
  0x13   :  { %1708 = vmatprep.subr.bf16.mxu1 %v1725_v11  ;;  %344 = vmatprep.subr.bf16.mxu0 %v1725_v11  ;;  %v1730_v18 = vld [vmem:[%s2383_s2 + $0x10] ss:$8 sps:$4 sm:$0xff]   ;;  %v56_v19 = vld [vmem:[%s2381_s0 + $0x28] sm:$0xff]  ;;  %v55_v20 = vld [vmem:[%s2381_s0 + $0x20] sm:$0xff] }
  0x14   :  { %115 = vperm.xlu1 %1721, %v66_v3   ;;  %109 = vperm.xlu0 %1720, %v64_v4   ;;  %v1731_v21 = vld [vmem:[%s2383_s2 + $0x4] ss:$8 sps:$4 sm:$0xff]   ;;  %v1733_v22 = vld [vmem:[%s2383_s2] ss:$8 sps:$4 sm:$0xff]   ;;  %v1736_v23 = vld [vmem:[#allocation3 + $0x34] ss:$8 sps:$4 sm:$0xff]  }
  0x15   :  { %v162_v24 = vld [vmem:[%s2382_s1 + $0x28] sm:$0xff]  ;;  %v161_v25 = vld [vmem:[%s2382_s1 + $0x20] sm:$0xff]  ;;  %v58_v26 = vld [vmem:[%s2381_s0 + $0x38] sm:$0xff] }
  0x16   :  { %1712 = vmatpush1.bf16.msra.mxu1 %v1727_v14  ;;  %345 = vmatpush1.bf16.msra.mxu0 %v1727_v14  ;;  %v57_v27 = vld [vmem:[%s2381_s0 + $0x30] sm:$0xff]  ;;  %v164_v28 = vld [vmem:[%s2382_s1 + $0x38] sm:$0xff]  ;;  %v60_v30 = vld [vmem:[%s2381_s0 + $0x48] sm:$0xff] }
  0x17   :  { %1709 = vmatprep.subr.bf16.mxu1 %v1728_v15  ;;  %346 = vmatprep.subr.bf16.mxu0 %v1728_v15  ;;  %v163_v29 = vld [vmem:[%s2382_s1 + $0x30] sm:$0xff]  ;;  %v59_v31 = vld [vmem:[%s2381_s0 + $0x40] sm:$0xff]  ;;  %v166_v32 = vld [vmem:[%s2382_s1 + $0x48] sm:$0xff] }
  0x18   :  { %73 = vperm.xlu1 %1721, %v52_v5   ;;  %70 = vperm.xlu0 %1720, %v51_v6   ;;  %v165_v33 = vld [vmem:[%s2382_s1 + $0x40] sm:$0xff]  ;;  %v62_v34 = vld [vmem:[%s2381_s0 + $0x58] sm:$0xff]  ;;  %v61_v35 = vld [vmem:[%s2381_s0 + $0x50] sm:$0xff] }
  0x19   :  { %v168_v36 = vld [vmem:[%s2382_s1 + $0x58] sm:$0xff]  ;;  %v167_v37 = vld [vmem:[%s2382_s1 + $0x50] sm:$0xff]  ;;  %v170_v38 = vld [vmem:[%s2382_s1 + $0x68] sm:$0xff] }
  0x1a   :  { %1713 = vmatpush1.bf16.msra.mxu1 %v1730_v18  ;;  %347 = vmatpush1.bf16.msra.mxu0 %v1730_v18  ;;  %v169_v39 = vld [vmem:[%s2382_s1 + $0x60] sm:$0xff]  ;;  %v172_v40 = vld [vmem:[%s2382_s1 + $0x78] sm:$0xff]  ;;  %v171_v41 = vld [vmem:[%s2382_s1 + $0x70] sm:$0xff] }
  0x1b   :  { %1710 = vmatprep.subr.bf16.mxu1 %v1731_v21  ;;  %348 = vmatprep.subr.bf16.mxu0 %v1731_v21  ;;  %v1750_v42 = vld [vmem:[%s2385_s4 + $0xf8] sm:$0xff]   ;;  %v1739_v54 = vld [vmem:[#allocation3 + $0x24] ss:$8 sps:$4 sm:$0xff]   ;;  %v1737_v59 = vld [vmem:[#allocation3 + $0x20] ss:$8 sps:$4 sm:$0xff]  }
  0x1c   :  { %177 = vperm.xlu1 %1721, %v158_v7   ;;  %174 = vperm.xlu0 %1720, %v157_v8   ;;  %v1734_v52 = vld [vmem:[#allocation3 + $0x30] ss:$8 sps:$4 sm:$0xff]   ;;  %v1742_v61 = vld [vmem:[#allocation3 + $0x14] ss:$8 sps:$4 sm:$0xff]   ;;  %v1745_v7 = vld [vmem:[#allocation3 + $0x4] ss:$8 sps:$4 sm:$0xff]  }
  0x1d   :  { %v1752_v62 = vld [vmem:[%s2385_s4 + $0xb8] sm:$0xff]   ;;  %v1754_v4 = vld [vmem:[%s2385_s4 + $0xf0] sm:$0xff]   ;;  %v1758_v11 = vld [vmem:[%s2385_s4 + $0xe8] sm:$0xff]  }
  0x1e   :  { %1714 = vmatpush1.bf16.msra.mxu1 %v1733_v22  ;;  %349 = vmatpush1.bf16.msra.mxu0 %v1733_v22  ;;  %v1740_v5 = vld [vmem:[#allocation3 + $0x10] ss:$8 sps:$4 sm:$0xff]   ;;  %v1743_v14 = vld [vmem:[#allocation3] ss:$8 sps:$4 sm:$0xff]  }
  0x1f   :  { %543 = vmatprep.subr.bf16.mxu1 %v1736_v23  ;;  %1531 = vmatprep.subr.bf16.mxu0 %v1750_v42  ;;  %v1755_v8 = vld [vmem:[%s2385_s4 + $0xb0] sm:$0xff]   ;;  %v1762_v22 = vld [vmem:[%s2385_s4 + $0xe0] sm:$0xff]   ;;  %v1747_v23 = vld [vmem:[%s2385_s4 + $0x38] sm:$0xff]  }
  0x20   :  { %79 = vperm.xlu1 %1721, %v54_v12   ;;  %76 = vperm.xlu0 %1720, %v53_v13  }
  0x24   :  { %183 = vperm.xlu1 %1721, %v160_v16   ;;  %180 = vperm.xlu0 %1720, %v159_v17   ;;  %v1746_v16 = vld [vmem:[%s2385_s4 + $0x78] sm:$0xff]   ;;  %v1759_v17 = vld [vmem:[%s2385_s4 + $0xa8] sm:$0xff]  }
  0x28   :  { %85 = vperm.xlu1 %1721, %v56_v19   ;;  %82 = vperm.xlu0 %1720, %v55_v20  }
  0x2c   :  { %189 = vperm.xlu1 %1721, %v162_v24   ;;  %186 = vperm.xlu0 %1720, %v161_v25   ;;  %v1748_v25 = vld [vmem:[%s2385_s4 + $0x70] sm:$0xff]  }
  0x30   :  { %91 = vperm.xlu1 %1721, %v58_v26   ;;  %88 = vperm.xlu0 %1720, %v57_v27   ;;  %v1763_v26 = vld [vmem:[%s2385_s4 + $0xa0] sm:$0xff]  }
  0x34   :  { %195 = vperm.xlu1 %1721, %v164_v28   ;;  %192 = vperm.xlu0 %1720, %v163_v29  }
  0x38   :  { %97 = vperm.xlu1 %1721, %v60_v30   ;;  %94 = vperm.xlu0 %1720, %v59_v31   ;;  %v1749_v31 = vld [vmem:[%s2385_s4 + $0x30] sm:$0xff]  }
  0x3c   :  { %201 = vperm.xlu1 %1721, %v166_v32   ;;  %198 = vperm.xlu0 %1720, %v165_v33   ;;  %v1751_v33 = vld [vmem:[%s2385_s4 + $0x68] sm:$0xff]  }
  0x40   :  { %103 = vperm.xlu1 %1721, %v62_v34   ;;  %100 = vperm.xlu0 %1720, %v61_v35  }
  0x44   :  { %207 = vperm.xlu1 %1721, %v168_v36   ;;  %204 = vperm.xlu0 %1720, %v167_v37  }
  0x48   :  { %213 = vperm.xlu1 %1721, %v170_v38   ;;  %210 = vperm.xlu0 %1720, %v169_v39   ;;  %v1753_v38 = vld [vmem:[%s2385_s4 + $0x28] sm:$0xff]  }
  0x4c   :  { %219 = vperm.xlu1 %1721, %v172_v40   ;;  %216 = vperm.xlu0 %1720, %v171_v41   ;;  %v1756_v40 = vld [vmem:[%s2385_s4 + $0x60] sm:$0xff]  }
  0x8b   :  { %v113_v45 = vpop.permute.xlu1 %112  ;;  %v107_v46 = vpop.permute.xlu0 %106 }
  0x8c   :  { %vm129_vm0 = vcmp.eq.s32.totalorder %v107_v46, %v1998_v44  ;;  %vm131_vm3 = vcmp.eq.s32.totalorder %v113_v45, %v1998_v44  ;;  %v1757_v46 = vld [vmem:[%s2385_s4 + $0x20] sm:$0xff]  }
  0x8d   :  { %v145_v50 = vsel %vm129_vm0, 1.0, %v1812_v49  ;;  %v147_v63 = vsel %vm131_vm3, 1.0, %v1812_v49 }
  0x8f   :  { %v116_v47 = vpop.permute.xlu1 %115  ;;  %v110_v48 = vpop.permute.xlu0 %109 }
  0x90   :  { %vm130_vm1 = vcmp.eq.s32.totalorder %v110_v48, %v1998_v44  ;;  %vm132_vm4 = vcmp.eq.s32.totalorder %v116_v47, %v1998_v44  ;;  %v1760_v48 = vld [vmem:[%s2385_s4 + $0x58] sm:$0xff]  }
  0x91   :  { %v146_v51 = vsel %vm130_vm1, 1.0, %v1812_v49  ;;  %v148_v1 = vsel %vm132_vm4, 1.0, %v1812_v49 }
  0x92   :  { %v155_v53 = vpack.c.bf16 %v146_v51, %v145_v50  ;;  %v156_v6 = vpack.c.bf16 %v148_v1, %v147_v63 }
  0x93   :  { %v74_v55 = vpop.permute.xlu1 %73  ;;  %v71_v56 = vpop.permute.xlu0 %70 }
  0x94   :  { %vm118_vm5 = vcmp.eq.s32.totalorder %v74_v55, %v1998_v44  ;;  %vm117_vm6 = vcmp.eq.s32.totalorder %v71_v56, %v1998_v44  ;;  %1470 = vmatmul.mubr.msk.bf16.vlgmr.msra.gmra.mxu1 %vm309_vm2, %v155_v53 }
  0x95   :  { %v134_v57 = vsel %vm118_vm5, 1.0, %v1812_v49  ;;  %v133_v58 = vsel %vm117_vm6, 1.0, %v1812_v49  ;;  %544 = vmatpush1.bf16.msra.mxu1 %v1734_v52  ;;  %436 = vmatprep.mubr.bf16.mxu1 %v1811_v0 }
  0x96   :  { %v149_v60 = vpack.c.bf16 %v134_v57, %v133_v58  ;;  %545 = vmatprep.subr.bf16.mxu1 %v1739_v54  ;;  %v1761_v54 = vld [vmem:[%s2385_s4 + $0x18] sm:$0xff]  }
  0x97   :  { %v178_v2 = vpop.permute.xlu1 %177  ;;  %v175_v3 = vpop.permute.xlu0 %174 }
  0x98   :  { %1464 = vmatmul.mubr.msk.bf16.vlgmr.msra.gmra.mxu0 %vm309_vm2, %v149_v60  ;;  %vm222_vm7 = vcmp.eq.s32.totalorder %v178_v2, %v1998_v44  ;;  %vm221_vm8 = vcmp.eq.s32.totalorder %v175_v3, %v1998_v44 }
  0x99   :  { %546 = vmatpush1.bf16.msra.mxu1 %v1737_v59  ;;  %376 = vmatprep.mubr.bf16.mxu0 %v1811_v0  ;;  %v238_v18 = vsel %vm222_vm7, 1.0, %v1812_v49  ;;  %v237_v19 = vsel %vm221_vm8, 1.0, %v1812_v49 }
  0x9a   :  { %547 = vmatprep.subr.bf16.mxu1 %v1742_v61  ;;  %1532 = vmatpush3.bf16.msra.mxu0 %v1752_v62  ;;  %v253_v24 = vpack.c.bf16 %v238_v18, %v237_v19 }
  0x9b   :  { %v80_v9 = vpop.permute.xlu1 %79  ;;  %v77_v10 = vpop.permute.xlu0 %76  ;;  %1533 = vmatprep.subr.bf16.mxu0 %v1754_v4 }
  0x9c   :  { %vm120_vm9 = vcmp.eq.s32.totalorder %v80_v9, %v1998_v44  ;;  %vm119_vm10 = vcmp.eq.s32.totalorder %v77_v10, %v1998_v44  ;;  %1471 = vmatmul.mubr.msk.bf16.gmra.mxu1 %vm309_vm2, %v156_v6 }
  0x9d   :  { %v136_v12 = vsel %vm120_vm9, 1.0, %v1812_v49  ;;  %v135_v13 = vsel %vm119_vm10, 1.0, %v1812_v49  ;;  %548 = vmatpush1.bf16.msra.mxu1 %v1740_v5  ;;  %567 = vmatprep.mubr.bf16.mxu1 %v1811_v0 }
  0x9e   :  { %v150_v15 = vpack.c.bf16 %v136_v12, %v135_v13  ;;  %549 = vmatprep.subr.bf16.mxu1 %v1745_v7  ;;  %1534 = vmatpush3.bf16.msra.mxu0 %v1755_v8 }
  0x9f   :  { %v184_v20 = vpop.permute.xlu1 %183  ;;  %v181_v21 = vpop.permute.xlu0 %180  ;;  %1535 = vmatprep.subr.bf16.mxu0 %v1758_v11 }
  0xa0   :  { %1465 = vmatmul.mubr.msk.bf16.gmra.mxu0 %vm309_vm2, %v150_v15  ;;  %vm224_vm11 = vcmp.eq.s32.totalorder %v184_v20, %v1998_v44  ;;  %vm223_vm12 = vcmp.eq.s32.totalorder %v181_v21, %v1998_v44 }
  0xa1   :  { %550 = vmatpush1.bf16.msra.mxu1 %v1743_v14  ;;  %386 = vmatprep.mubr.bf16.mxu0 %v1811_v0  ;;  %v240_v34 = vsel %vm224_vm11, 1.0, %v1812_v49  ;;  %v239_v35 = vsel %vm223_vm12, 1.0, %v1812_v49 }
  0xa2   :  { %1595 = vmatprep.subr.bf16.mxu1 %v1746_v16  ;;  %1536 = vmatpush3.bf16.msra.mxu0 %v1759_v17  ;;  %v254_v39 = vpack.c.bf16 %v240_v34, %v239_v35  ;;  %v1775_v34 = vld [vmem:[%s2385_s4 + $0x88] sm:$0xff]   ;;  %v1776_v35 = vld [vmem:[%s2385_s4 + $0xc0] sm:$0xff]  }
  0xa3   :  { %v86_v27 = vpop.permute.xlu1 %85  ;;  %v83_v28 = vpop.permute.xlu0 %82  ;;  %1537 = vmatprep.subr.bf16.mxu0 %v1762_v22 }
  0xa4   :  { %vm122_vm13 = vcmp.eq.s32.totalorder %v86_v27, %v1998_v44  ;;  %vm121_vm14 = vcmp.eq.s32.totalorder %v83_v28, %v1998_v44  ;;  %1480 = vmatmul.mubr.msk.bf16.vlgmr.msra.gmra.mxu1 %vm309_vm2, %v253_v24  ;;  %v1766_v27 = vld [vmem:[%s2385_s4 + $0x98] sm:$0xff]   ;;  %v1768_v28 = vld [vmem:[%s2385_s4 + $0x48] sm:$0xff]  }
  0xa5   :  { %v138_v29 = vsel %vm122_vm13, 1.0, %v1812_v49  ;;  %v137_v30 = vsel %vm121_vm14, 1.0, %v1812_v49  ;;  %577 = vmatprep.mubr.bf16.mxu1 %v1811_v0  ;;  %1596 = vmatpush3.bf16.msra.mxu1 %v1747_v23 }
  0xa6   :  { %v151_v32 = vpack.c.bf16 %v138_v29, %v137_v30  ;;  %1597 = vmatprep.subr.bf16.mxu1 %v1748_v25  ;;  %1538 = vmatpush3.bf16.msra.mxu0 %v1763_v26  ;;  %v1764_v26 = vld [vmem:[%s2385_s4 + $0xd8] sm:$0xff]   ;;  %v1769_v29 = vld [vmem:[%s2385_s4 + $0xd0] sm:$0xff]   ;;  %v1772_v30 = vld [vmem:[%s2385_s4 + $0x40] sm:$0xff]  }
  0xa7   :  { %v190_v36 = vpop.permute.xlu1 %189  ;;  %v187_v37 = vpop.permute.xlu0 %186  ;;  %1539 = vmatprep.subr.bf16.mxu0 %v1764_v26 }
  0xa8   :  { %1466 = vmatmul.mubr.msk.bf16.gmra.mxu0 %vm309_vm2, %v151_v32  ;;  %vm226_vm15 = vcmp.eq.s32.totalorder %v190_v36, %v1998_v44  ;;  %vm225_vm0 = vcmp.eq.s32.totalorder %v187_v37, %v1998_v44  ;;  %v1773_v32 = vld [vmem:[%s2385_s4] sm:$0xff]   ;;  %v1778_v37 = vld [vmem:[%s2387_s6 + $0x38] sm:$0xff]  }
  0xa9   :  { %396 = vmatprep.mubr.bf16.mxu0 %v1811_v0  ;;  %1598 = vmatpush3.bf16.msra.mxu1 %v1749_v31  ;;  %v242_v50 = vsel %vm226_vm15, 1.0, %v1812_v49  ;;  %v241_v51 = vsel %vm225_vm0, 1.0, %v1812_v49  ;;  %v1771_v31 = vld [vmem:[%s2385_s4 + $0x90] sm:$0xff]   ;;  %v1777_v36 = vld [vmem:[%s2385_s4 + $0x80] sm:$0xff]  }
  0xaa   :  { %1599 = vmatprep.subr.bf16.mxu1 %v1751_v33  ;;  %v255_v55 = vpack.c.bf16 %v242_v50, %v241_v51  ;;  %1540 = vmatpush3.bf16.msra.mxu0 %v1766_v27  ;;  %v1774_v33 = vld [vmem:[%s2385_s4 + $0xc8] sm:$0xff]  }
  0xab   :  { %v92_v41 = vpop.permute.xlu1 %91  ;;  %v89_v42 = vpop.permute.xlu0 %88  ;;  %1541 = vmatprep.subr.bf16.mxu0 %v1769_v29 }
  0xac   :  { %vm124_vm1 = vcmp.eq.s32.totalorder %v92_v41, %v1998_v44  ;;  %vm123_vm3 = vcmp.eq.s32.totalorder %v89_v42, %v1998_v44  ;;  %1481 = vmatmul.mubr.msk.bf16.gmra.mxu1 %vm309_vm2, %v254_v39 }
  0xad   :  { %v140_v43 = vsel %vm124_vm1, 1.0, %v1812_v49  ;;  %v139_v45 = vsel %vm123_vm3, 1.0, %v1812_v49  ;;  %587 = vmatprep.mubr.bf16.mxu1 %v1811_v0  ;;  %1600 = vmatpush3.bf16.msra.mxu1 %v1753_v38  ;;  %vm1434_vm3 = vcmask 7168  }
  0xae   :  { %v152_v47 = vpack.c.bf16 %v140_v43, %v139_v45  ;;  %1601 = vmatprep.subr.bf16.mxu1 %v1756_v40  ;;  %1542 = vmatpush3.bf16.msra.mxu0 %v1771_v31 }
  0xaf   :  { %v196_v52 = vpop.permute.xlu1 %195  ;;  %v193_v53 = vpop.permute.xlu0 %192  ;;  %1543 = vmatprep.subr.bf16.mxu0 %v1774_v33 }
  0xb0   :  { %1467 = vmatmul.mubr.msk.bf16.gmra.mxu0 %vm309_vm2, %v152_v47  ;;  %vm228_vm4 = vcmp.eq.s32.totalorder %v196_v52, %v1998_v44  ;;  %vm227_vm5 = vcmp.eq.s32.totalorder %v193_v53, %v1998_v44 }
  0xb1   :  { %406 = vmatprep.mubr.bf16.mxu0 %v1811_v0  ;;  %1602 = vmatpush3.bf16.msra.mxu1 %v1757_v46  ;;  %v244_v61 = vsel %vm228_vm4, 1.0, %v1812_v49  ;;  %v243_v62 = vsel %vm227_vm5, 1.0, %v1812_v49 }
  0xb2   :  { %1603 = vmatprep.subr.bf16.mxu1 %v1760_v48  ;;  %v256_v2 = vpack.c.bf16 %v244_v61, %v243_v62  ;;  %1544 = vmatpush3.bf16.msra.mxu0 %v1775_v34 }
  0xb3   :  { %v98_v56 = vpop.permute.xlu1 %97  ;;  %v95_v57 = vpop.permute.xlu0 %94  ;;  %1545 = vmatprep.subr.bf16.mxu0 %v1776_v35 }
  0xb4   :  { %vm126_vm6 = vcmp.eq.s32.totalorder %v98_v56, %v1998_v44  ;;  %vm125_vm7 = vcmp.eq.s32.totalorder %v95_v57, %v1998_v44  ;;  %1482 = vmatmul.mubr.msk.bf16.gmra.mxu1 %vm309_vm2, %v255_v55 }
  0xb5   :  { %v142_v58 = vsel %vm126_vm6, 1.0, %v1812_v49  ;;  %v141_v59 = vsel %vm125_vm7, 1.0, %v1812_v49  ;;  %597 = vmatprep.mubr.bf16.mxu1 %v1811_v0  ;;  %1604 = vmatpush3.bf16.msra.mxu1 %v1761_v54 }
  0xb6   :  { %v153_v60 = vpack.c.bf16 %v142_v58, %v141_v59  ;;  %1546 = vmatpush3.bf16.msra.mxu0 %v1777_v36 }
  0xb7   :  { %v202_v63 = vpop.permute.xlu1 %201  ;;  %v199_v1 = vpop.permute.xlu0 %198  ;;  %1675 = vmatprep.subr.bf16.mxu0 %v1778_v37 }
  0xb8   :  { %1468 = vmatmul.mubr.msk.bf16.gmra.mxu0 %vm309_vm2, %v153_v60  ;;  %vm230_vm8 = vcmp.eq.s32.totalorder %v202_v63, %v1998_v44  ;;  %vm229_vm9 = vcmp.eq.s32.totalorder %v199_v1, %v1998_v44 }
  0xb9   :  { %416 = vmatprep.mubr.bf16.mxu0 %v1811_v0  ;;  %v246_v8 = vsel %vm230_vm8, 1.0, %v1812_v49  ;;  %v245_v9 = vsel %vm229_vm9, 1.0, %v1812_v49 }
  0xba   :  { %v257_v12 = vpack.c.bf16 %v246_v8, %v245_v9 }
  0xbb   :  { %v104_v3 = vpop.permute.xlu1 %103  ;;  %v101_v4 = vpop.permute.xlu0 %100 }
  0xbc   :  { %vm128_vm10 = vcmp.eq.s32.totalorder %v104_v3, %v1998_v44  ;;  %vm127_vm11 = vcmp.eq.s32.totalorder %v101_v4, %v1998_v44  ;;  %1483 = vmatmul.mubr.msk.bf16.gmra.mxu1 %vm309_vm2, %v256_v2 }
  0xbd   :  { %v144_v5 = vsel %vm128_vm10, 1.0, %v1812_v49  ;;  %v143_v6 = vsel %vm127_vm11, 1.0, %v1812_v49  ;;  %607 = vmatprep.mubr.bf16.mxu1 %v1811_v0 }
  0xbe   :  { %v154_v7 = vpack.c.bf16 %v144_v5, %v143_v6 }
  0xbf   :  { %v208_v10 = vpop.permute.xlu1 %207  ;;  %v205_v11 = vpop.permute.xlu0 %204 }
  0xc0   :  { %1469 = vmatmul.mubr.msk.bf16.gmra.mxu0 %vm309_vm2, %v154_v7  ;;  %vm232_vm12 = vcmp.eq.s32.totalorder %v208_v10, %v1998_v44  ;;  %vm231_vm13 = vcmp.eq.s32.totalorder %v205_v11, %v1998_v44 }
  0xc1   :  { %v248_v18 = vsel %vm232_vm12, 1.0, %v1812_v49  ;;  %v247_v19 = vsel %vm231_vm13, 1.0, %v1812_v49 }
  0xc2   :  { %v258_v24 = vpack.c.bf16 %v248_v18, %v247_v19 }
  0xc3   :  { %v214_v13 = vpop.permute.xlu1 %213  ;;  %v211_v14 = vpop.permute.xlu0 %210 }
  0xc4   :  { %vm234_vm14 = vcmp.eq.s32.totalorder %v214_v13, %v1998_v44  ;;  %vm233_vm15 = vcmp.eq.s32.totalorder %v211_v14, %v1998_v44  ;;  %1484 = vmatmul.mubr.msk.bf16.gmra.mxu1 %vm309_vm2, %v257_v12 }
  0xc5   :  { %v250_v15 = vsel %vm234_vm14, 1.0, %v1812_v49  ;;  %v249_v16 = vsel %vm233_vm15, 1.0, %v1812_v49  ;;  %617 = vmatprep.mubr.bf16.mxu1 %v1811_v0 }
  0xc6   :  { %v259_v17 = vpack.c.bf16 %v250_v15, %v249_v16 }
  0xc7   :  { %v220_v20 = vpop.permute.xlu1 %219  ;;  %v217_v21 = vpop.permute.xlu0 %216 }
  0xc8   :  { %vm236_vm0 = vcmp.eq.s32.totalorder %v220_v20, %v1998_v44  ;;  %vm235_vm1 = vcmp.eq.s32.totalorder %v217_v21, %v1998_v44  ;;  %v1765_v44 = vld [vmem:[%s2385_s4 + $0x50] sm:$0xff]  }
  0xc9   :  { %v252_v22 = vsel %vm236_vm0, 1.0, %v1812_v49  ;;  %v251_v23 = vsel %vm235_vm1, 1.0, %v1812_v49  ;;  %v1767_v49 = vld [vmem:[%s2385_s4 + $0x10] sm:$0xff]   ;;  %1605 = vmatprep.subr.bf16.mxu1 %v1765_v44 }
  0xca   :  { %v260_v25 = vpack.c.bf16 %v252_v22, %v251_v23  ;;  %1606 = vmatpush3.bf16.msra.mxu1 %v1767_v49 }
  0xcb   :  { %1607 = vmatprep.subr.bf16.mxu1 %v1768_v28 }
  0xcc   :  { %1485 = vmatmul.mubr.msk.bf16.gmra.mxu1 %vm309_vm2, %v258_v24 }
  0xcd   :  { %627 = vmatprep.mubr.bf16.mxu1 %v1811_v0 }
  0xd4   :  { %1486 = vmatmul.mubr.msk.bf16.gmra.mxu1 %vm309_vm2, %v259_v17 }
  0xd5   :  { %637 = vmatprep.mubr.bf16.mxu1 %v1811_v0  ;;  %v1770_v0 = vld [vmem:[%s2385_s4 + $0x8] sm:$0xff]  }
  0xd6   :  { %1608 = vmatpush3.bf16.msra.mxu1 %v1770_v0 }
  0xd7   :  { %1609 = vmatprep.subr.bf16.mxu1 %v1772_v30 }
  0xda   :  { %1610 = vmatpush3.bf16.msra.mxu1 %v1773_v32 }
  0xdc   :  { %1487 = vmatmul.mubr.msk.bf16.gmra.mxu1 %vm309_vm2, %v260_v25 }
 0x154   :  { %v2190_v38 = vpop.f32.mrf.mxu1 }
 0x156   :  { %v2192_v39 = vpop.f32.mrf.mxu1 }
 0x158   :  { %v368_v40 = vpop.f32.mrf.mxu0  ;;  %v2194_v41 = vpop.f32.mrf.mxu1 }
 0x15a   :  { %v370_v42 = vpop.f32.mrf.mxu0  ;;  %v2196_v43 = vpop.f32.mrf.mxu1 }
 0x15c   :  { %v372_v45 = vpop.f32.mrf.mxu0  ;;  %v2198_v46 = vpop.f32.mrf.mxu1 }
 0x15d   :  { %v447_v51 = vpack.c.bf16 %v372_v45, %v368_v40 }
 0x15e   :  { %v374_v47 = vpop.f32.mrf.mxu0  ;;  %v2200_v48 = vpop.f32.mrf.mxu1 }
 0x15f   :  { %v448_v50 = vpack.c.bf16 %v374_v47, %v370_v42 }
 0x160   :  { %v378_v52 = vpop.f32.mrf.mxu0  ;;  %v2202_v53 = vpop.f32.mrf.mxu1 }
 0x161   :  { %1049 = vmatprep.mubr.bf16.mxu1 %v448_v50 }
 0x162   :  { %v380_v54 = vpop.f32.mrf.mxu0  ;;  %v2204_v55 = vpop.f32.mrf.mxu1  ;;  %1050 = vmatmul.mubr.bf16.vlgmr.msra.gmra.mxu1 %v447_v51 }
 0x164   :  { %v382_v56 = vpop.f32.mrf.mxu0  ;;  %v569_v57 = vpop.f32.mrf.mxu1 }
 0x165   :  { %v449_v61 = vpack.c.bf16 %v382_v56, %v378_v52 }
 0x166   :  { %v384_v58 = vpop.f32.mrf.mxu0  ;;  %v571_v59 = vpop.f32.mrf.mxu1 }
 0x167   :  { %v450_v60 = vpack.c.bf16 %v384_v58, %v380_v54  ;;  %v460_v54 = vpack.c.bf16 %v2196_v43, %v2192_v39 }
 0x168   :  { %v388_v62 = vpop.f32.mrf.mxu0  ;;  %v573_v63 = vpop.f32.mrf.mxu1 }
 0x169   :  { %1057 = vmatprep.mubr.bf16.mxu1 %v450_v60  ;;  %v648_v4 = vpack.c.bf16 %v573_v63, %v569_v57  ;;  %v462_v63 = vpack.c.bf16 %v2204_v55, %v2200_v48 }
 0x16a   :  { %v390_v1 = vpop.f32.mrf.mxu0  ;;  %v575_v2 = vpop.f32.mrf.mxu1  ;;  %1058 = vmatmul.mubr.bf16.gmra.mxu1 %v449_v61  ;;  %v459_v61 = vpack.c.bf16 %v2194_v41, %v2190_v38 }
 0x16b   :  { %v649_v3 = vpack.c.bf16 %v575_v2, %v571_v59 }
 0x16c   :  { %v392_v5 = vpop.f32.mrf.mxu0  ;;  %v579_v6 = vpop.f32.mrf.mxu1 }
 0x16d   :  { %856 = vmatprep.mubr.bf16.mxu0 %v649_v3  ;;  %v451_v10 = vpack.c.bf16 %v392_v5, %v388_v62 }
 0x16e   :  { %v394_v7 = vpop.f32.mrf.mxu0  ;;  %v581_v8 = vpop.f32.mrf.mxu1  ;;  %857 = vmatmul.mubr.bf16.vlgmr.msra.gmra.mxu0 %v648_v4  ;;  %v461_v4 = vpack.c.bf16 %v2202_v53, %v2198_v46  ;;  %v1780_v46 = vld [vmem:[%s2387_s6 + $0x28] sm:$0xff]   ;;  %v1781_v53 = vld [vmem:[%s2387_s6 + $0x20] sm:$0xff]  }
 0x16f   :  { %v452_v9 = vpack.c.bf16 %v394_v7, %v390_v1  ;;  %1676 = vmatpush3.bf16.msra.mxu0 %v1778_v37 }
 0x170   :  { %v398_v11 = vpop.f32.mrf.mxu0  ;;  %v583_v12 = vpop.f32.mrf.mxu1 }
 0x171   :  { %1065 = vmatprep.mubr.bf16.mxu1 %v452_v9  ;;  %v650_v16 = vpack.c.bf16 %v583_v12, %v579_v6  ;;  %v1782_v12 = vld [vmem:[%s2387_s6 + $0x18] sm:$0xff]  }
 0x172   :  { %v400_v13 = vpop.f32.mrf.mxu0  ;;  %v585_v14 = vpop.f32.mrf.mxu1  ;;  %1066 = vmatmul.mubr.bf16.gmra.mxu1 %v451_v10 }
 0x173   :  { %v651_v15 = vpack.c.bf16 %v585_v14, %v581_v8  ;;  %v1784_v14 = vld [vmem:[%s2387_s6 + $0x8] sm:$0xff]  }
 0x174   :  { %v402_v17 = vpop.f32.mrf.mxu0  ;;  %v589_v18 = vpop.f32.mrf.mxu1 }
 0x175   :  { %864 = vmatprep.mubr.bf16.mxu0 %v651_v15  ;;  %v453_v22 = vpack.c.bf16 %v402_v17, %v398_v11  ;;  %v1779_v11 = vld [vmem:[%s2387_s6 + $0x30] sm:$0xff]   ;;  %v1785_v15 = vld [vmem:[%s2387_s6] sm:$0xff]  }
 0x176   :  { %v404_v19 = vpop.f32.mrf.mxu0  ;;  %v591_v20 = vpop.f32.mrf.mxu1  ;;  %865 = vmatmul.mubr.bf16.gmra.mxu0 %v650_v16  ;;  %1677 = vmatprep.subr.bf16.mxu0 %v1779_v11 }
 0x177   :  { %v454_v21 = vpack.c.bf16 %v404_v19, %v400_v13  ;;  %1678 = vmatpush3.bf16.msra.mxu0 %v1779_v11  ;;  %v1783_v13 = vld [vmem:[%s2387_s6 + $0x10] sm:$0xff]  }
 0x178   :  { %v408_v23 = vpop.f32.mrf.mxu0  ;;  %v593_v24 = vpop.f32.mrf.mxu1  ;;  %1679 = vmatprep.subr.bf16.mxu0 %v1780_v46 }
 0x179   :  { %1073 = vmatprep.mubr.bf16.mxu1 %v454_v21  ;;  %v652_v49 = vpack.c.bf16 %v593_v24, %v589_v18 }
 0x17a   :  { %v410_v25 = vpop.f32.mrf.mxu0  ;;  %v595_v26 = vpop.f32.mrf.mxu1  ;;  %1074 = vmatmul.mubr.bf16.gmra.mxu1 %v453_v22 }
 0x17b   :  { %v653_v44 = vpack.c.bf16 %v595_v26, %v591_v20  ;;  %1680 = vmatpush3.bf16.msra.mxu0 %v1780_v46 }
 0x17c   :  { %v412_v27 = vpop.f32.mrf.mxu0  ;;  %v599_v28 = vpop.f32.mrf.mxu1  ;;  %1681 = vmatprep.subr.bf16.mxu0 %v1781_v53 }
 0x17d   :  { %872 = vmatprep.mubr.bf16.mxu0 %v653_v44  ;;  %v455_v31 = vpack.c.bf16 %v412_v27, %v408_v23 }
 0x17e   :  { %v414_v0 = vpop.f32.mrf.mxu0  ;;  %v601_v29 = vpop.f32.mrf.mxu1  ;;  %873 = vmatmul.mubr.bf16.gmra.mxu0 %v652_v49 }
 0x17f   :  { %v456_v30 = vpack.c.bf16 %v414_v0, %v410_v25  ;;  %1682 = vmatpush3.bf16.msra.mxu0 %v1781_v53  ;;  %v2238_v0 = vld [vmem:[%s2386_s5] ss:$0 sm:$0xff] }
 0x180   :  { %v418_v32 = vpop.f32.mrf.mxu0  ;;  %v603_v33 = vpop.f32.mrf.mxu1  ;;  %1683 = vmatprep.subr.bf16.mxu0 %v1782_v12 }
 0x181   :  { %1081 = vmatprep.mubr.bf16.mxu1 %v456_v30  ;;  %v654_v37 = vpack.c.bf16 %v603_v33, %v599_v28 }
 0x182   :  { %v420_v34 = vpop.f32.mrf.mxu0  ;;  %v605_v35 = vpop.f32.mrf.mxu1  ;;  %1082 = vmatmul.mubr.bf16.gmra.mxu1 %v455_v31 }
 0x183   :  { %v655_v36 = vpack.c.bf16 %v605_v35, %v601_v29  ;;  %1684 = vmatpush3.bf16.msra.mxu0 %v1782_v12 }
 0x184   :  { %v422_v40 = vpop.f32.mrf.mxu0  ;;  %v609_v42 = vpop.f32.mrf.mxu1  ;;  %1685 = vmatprep.subr.bf16.mxu0 %v1783_v13 }
 0x185   :  { %880 = vmatprep.mubr.bf16.mxu0 %v655_v36  ;;  %v457_v51 = vpack.c.bf16 %v422_v40, %v418_v32 }
 0x186   :  { %v424_v45 = vpop.f32.mrf.mxu0  ;;  %v611_v47 = vpop.f32.mrf.mxu1  ;;  %881 = vmatmul.mubr.bf16.gmra.mxu0 %v654_v37 }
 0x187   :  { %v458_v50 = vpack.c.bf16 %v424_v45, %v420_v34  ;;  %1686 = vmatpush3.bf16.msra.mxu0 %v1783_v13 }
 0x188   :  { %v613_v52 = vpop.f32.mrf.mxu1  ;;  %1687 = vmatprep.subr.bf16.mxu0 %v1784_v14 }
 0x189   :  { %1089 = vmatprep.mubr.bf16.mxu1 %v458_v50  ;;  %v656_v58 = vpack.c.bf16 %v613_v52, %v609_v42 }
 0x18a   :  { %v615_v56 = vpop.f32.mrf.mxu1  ;;  %1090 = vmatmul.mubr.bf16.gmra.mxu1 %v457_v51 }
 0x18b   :  { %v657_v57 = vpack.c.bf16 %v615_v56, %v611_v47  ;;  %1097 = vmatprep.mubr.bf16.mxu1 %v460_v54  ;;  %1688 = vmatpush3.bf16.msra.mxu0 %v1784_v14 }
 0x18c   :  { %v619_v59 = vpop.f32.mrf.mxu1  ;;  %1689 = vmatprep.subr.bf16.mxu0 %v1785_v15 }
 0x18d   :  { %888 = vmatprep.mubr.bf16.mxu0 %v657_v57 }
 0x18e   :  { %v621_v60 = vpop.f32.mrf.mxu1  ;;  %889 = vmatmul.mubr.bf16.gmra.mxu0 %v656_v58 }
 0x18f   :  { %1690 = vmatpush3.bf16.msra.mxu0 %v1785_v15 }
 0x190   :  { %v623_v62 = vpop.f32.mrf.mxu1 }
 0x191   :  { %v658_v43 = vpack.c.bf16 %v623_v62, %v619_v59 }
 0x192   :  { %v625_v1 = vpop.f32.mrf.mxu1  ;;  %1098 = vmatmul.mubr.bf16.gmra.mxu1 %v459_v61 }
 0x193   :  { %v659_v39 = vpack.c.bf16 %v625_v1, %v621_v60  ;;  %1105 = vmatprep.mubr.bf16.mxu1 %v462_v63 }
 0x194   :  { %v629_v2 = vpop.f32.mrf.mxu1 }
 0x195   :  { %896 = vmatprep.mubr.bf16.mxu0 %v659_v39 }
 0x196   :  { %v631_v3 = vpop.f32.mrf.mxu1  ;;  %897 = vmatmul.mubr.bf16.gmra.mxu0 %v658_v43 }
 0x198   :  { %v633_v5 = vpop.f32.mrf.mxu1 }
 0x199   :  { %v660_v41 = vpack.c.bf16 %v633_v5, %v629_v2 }
 0x19a   :  { %v635_v6 = vpop.f32.mrf.mxu1  ;;  %1106 = vmatmul.mubr.bf16.gmra.mxu1 %v461_v4 }
 0x19b   :  { %v661_v38 = vpack.c.bf16 %v635_v6, %v631_v3 }
 0x19c   :  { %v639_v7 = vpop.f32.mrf.mxu1 }
 0x19d   :  { %904 = vmatprep.mubr.bf16.mxu0 %v661_v38 }
 0x19e   :  { %v641_v48 = vpop.f32.mrf.mxu1  ;;  %905 = vmatmul.mubr.bf16.gmra.mxu0 %v660_v41 }
 0x1a0   :  { %v643_v55 = vpop.f32.mrf.mxu1 }
 0x1a1   :  { %v662_v10 = vpack.c.bf16 %v643_v55, %v639_v7 }
 0x1a2   :  { %v645_v8 = vpop.f32.mrf.mxu1 }
 0x1a3   :  { %v663_v9 = vpack.c.bf16 %v645_v8, %v641_v48 }
 0x1a5   :  { %912 = vmatprep.mubr.bf16.mxu0 %v663_v9 }
 0x1a6   :  { %913 = vmatmul.mubr.bf16.gmra.mxu0 %v662_v10 }
 0x222   :  { %v1611_v16 = vpop.f32.mrf.mxu1 }
 0x224   :  { %v1612_v17 = vpop.f32.mrf.mxu1 }
 0x225   :  { %v1613_v26 = vadd.f32 %v1612_v17, %v1611_v16 }
 0x226   :  { %v1614_v18 = vpop.f32.mrf.mxu1 }
 0x228   :  { %v1615_v19 = vpop.f32.mrf.mxu1 }
 0x229   :  { %v1616_v31 = vadd.f32 %v1615_v19, %v1614_v18 }
 0x22a   :  { %v1617_v20 = vpop.f32.mrf.mxu1 }
 0x22c   :  { %v1618_v21 = vpop.f32.mrf.mxu1 }
 0x22d   :  { %v1619_v42 = vadd.f32 %v1618_v21, %v1617_v20 }
 0x22e   :  { %v1547_v22 = vpop.f32.mrf.mxu0  ;;  %v1620_v23 = vpop.f32.mrf.mxu1 }
 0x230   :  { %v1548_v24 = vpop.f32.mrf.mxu0  ;;  %v1621_v25 = vpop.f32.mrf.mxu1 }
 0x231   :  { %v1549_v44 = vadd.f32 %v1548_v24, %v1547_v22  ;;  %v1622_v59 = vadd.f32 %v1621_v25, %v1620_v23 }
 0x232   :  { %v1550_v49 = vpop.f32.mrf.mxu0  ;;  %v1623_v27 = vpop.f32.mrf.mxu1 }
 0x233   :  { %v1052_v28 = vadd.f32 %v1613_v26, %v1549_v44 }
 0x234   :  { %v1551_v29 = vpop.f32.mrf.mxu0  ;;  %v1624_v30 = vpop.f32.mrf.mxu1 }
 0x235   :  { %v1552_v32 = vadd.f32 %v1551_v29, %v1550_v49  ;;  %v1121_v35 = vadd.f32 %v2238_v0, %v1052_v28  ;;  %v1625_v3 = vadd.f32 %v1624_v30, %v1623_v27 }
 0x236   :  { %v1553_v33 = vpop.f32.mrf.mxu0  ;;  %v1626_v34 = vpop.f32.mrf.mxu1 }
 0x237   :  { %v1055_v36 = vadd.f32 %v1616_v31, %v1552_v32  ;;  %v1137_v52 = vmax.f32 %v1121_v35, 0.0 }
 0x238   :  { %v1554_v37 = vpop.f32.mrf.mxu0  ;;  %v1627_v40 = vpop.f32.mrf.mxu1 }
 0x239   :  { %v1122_v45 = vadd.f32 %v2238_v0, %v1055_v36  ;;  %v1555_v47 = vadd.f32 %v1554_v37, %v1553_v33  ;;  %v1628_v9 = vadd.f32 %v1627_v40, %v1626_v34 }
 0x23a   :  { %v1556_v50 = vpop.f32.mrf.mxu0  ;;  %v1629_v51 = vpop.f32.mrf.mxu1 }
 0x23b   :  { %v1138_v54 = vmax.f32 %v1122_v45, 0.0  ;;  %v1060_v56 = vadd.f32 %v1619_v42, %v1555_v47 }
 0x23c   :  { %v1557_v57 = vpop.f32.mrf.mxu0  ;;  %v1630_v58 = vpop.f32.mrf.mxu1 }
 0x23d   :  { %v1558_v60 = vadd.f32 %v1557_v57, %v1556_v50  ;;  %v1153_v61 = vpack.c.bf16 %v1138_v54, %v1137_v52  ;;  %v1123_v1 = vadd.f32 %v2238_v0, %v1060_v56  ;;  %v1631_v16 = vadd.f32 %v1630_v58, %v1629_v51 }
 0x23e   :  { %v1559_v62 = vpop.f32.mrf.mxu0  ;;  %v1632_v63 = vpop.f32.mrf.mxu1 }
 0x23f   :  { %v1063_v39 = vadd.f32 %v1622_v59, %v1558_v60  ;;  %1691 = vmatprep.mubr.bf16.mxu0 %v1153_v61  ;;  %v1139_v41 = vmax.f32 %v1123_v1, 0.0 }
 0x240   :  { %v1560_v43 = vpop.f32.mrf.mxu0  ;;  %v1633_v2 = vpop.f32.mrf.mxu1 }
 0x241   :  { %v1124_v4 = vadd.f32 %v2238_v0, %v1063_v39  ;;  %v1561_v5 = vadd.f32 %v1560_v43, %v1559_v62  ;;  %v1634_v26 = vadd.f32 %v1633_v2, %v1632_v63 }
 0x242   :  { %v1562_v6 = vpop.f32.mrf.mxu0  ;;  %v1635_v38 = vpop.f32.mrf.mxu1 }
 0x243   :  { %v1140_v7 = vmax.f32 %v1124_v4, 0.0  ;;  %v1068_v48 = vadd.f32 %v1625_v3, %v1561_v5 }
 0x244   :  { %v1563_v55 = vpop.f32.mrf.mxu0  ;;  %v1636_v8 = vpop.f32.mrf.mxu1 }
 0x245   :  { %v1154_v10 = vpack.c.bf16 %v1140_v7, %v1139_v41  ;;  %v1564_v11 = vadd.f32 %v1563_v55, %v1562_v6  ;;  %v1125_v12 = vadd.f32 %v2238_v0, %v1068_v48  ;;  %v1637_v33 = vadd.f32 %v1636_v8, %v1635_v38 }
 0x246   :  { %v1565_v46 = vpop.f32.mrf.mxu0  ;;  %v1638_v53 = vpop.f32.mrf.mxu1 }
 0x247   :  { %v1071_v13 = vadd.f32 %v1628_v9, %v1564_v11  ;;  %1692 = vmatmul.mubr.bf16.vlgmr.msra.gmra.mxu0 %v1154_v10  ;;  %v1141_v21 = vmax.f32 %v1125_v12, 0.0 }
 0x248   :  { %v1566_v14 = vpop.f32.mrf.mxu0  ;;  %v1639_v15 = vpop.f32.mrf.mxu1 }
 0x249   :  { %v1126_v17 = vadd.f32 %v2238_v0, %v1071_v13  ;;  %v1567_v18 = vadd.f32 %v1566_v14, %v1565_v46  ;;  %v1640_v51 = vadd.f32 %v1639_v15, %v1638_v53 }
 0x24a   :  { %v1568_v19 = vpop.f32.mrf.mxu0  ;;  %v1641_v20 = vpop.f32.mrf.mxu1 }
 0x24b   :  { %v1142_v22 = vmax.f32 %v1126_v17, 0.0  ;;  %v1076_v23 = vadd.f32 %v1631_v16, %v1567_v18 }
 0x24c   :  { %v1569_v24 = vpop.f32.mrf.mxu0  ;;  %v1642_v25 = vpop.f32.mrf.mxu1 }
 0x24d   :  { %v1570_v44 = vadd.f32 %v1569_v24, %v1568_v19  ;;  %v1155_v49 = vpack.c.bf16 %v1142_v22, %v1141_v21  ;;  %v1127_v29 = vadd.f32 %v2238_v0, %v1076_v23  ;;  %v1643_v61 = vadd.f32 %v1642_v25, %v1641_v20 }
 0x24e   :  { %v1571_v27 = vpop.f32.mrf.mxu0  ;;  %v1644_v28 = vpop.f32.mrf.mxu1 }
 0x24f   :  { %v1079_v30 = vadd.f32 %v1634_v26, %v1570_v44  ;;  %1695 = vmatprep.mubr.bf16.mxu0 %v1155_v49  ;;  %v1143_v40 = vmax.f32 %v1127_v29, 0.0 }
 0x250   :  { %v1572_v31 = vpop.f32.mrf.mxu0  ;;  %v1645_v32 = vpop.f32.mrf.mxu1 }
 0x251   :  { %v1128_v34 = vadd.f32 %v2238_v0, %v1079_v30  ;;  %v1573_v35 = vadd.f32 %v1572_v31, %v1571_v27  ;;  %v1646_v5 = vadd.f32 %v1645_v32, %v1644_v28 }
 0x252   :  { %v1574_v36 = vpop.f32.mrf.mxu0  ;;  %v1647_v37 = vpop.f32.mrf.mxu1 }
 0x253   :  { %v1144_v42 = vmax.f32 %v1128_v34, 0.0  ;;  %v1084_v45 = vadd.f32 %v1637_v33, %v1573_v35 }
 0x254   :  { %v1575_v47 = vpop.f32.mrf.mxu0  ;;  %v1648_v50 = vpop.f32.mrf.mxu1 }
 0x255   :  { %v1576_v52 = vadd.f32 %v1575_v47, %v1574_v36  ;;  %v1156_v54 = vpack.c.bf16 %v1144_v42, %v1143_v40  ;;  %v1129_v58 = vadd.f32 %v2238_v0, %v1084_v45  ;;  %v1649_v9 = vadd.f32 %v1648_v50, %v1647_v37  ;;  %v2259_v45 = vld [vmem:[%s2388_s7] ss:$0 sm:$0xff] }
 0x256   :  { %v1577_v56 = vpop.f32.mrf.mxu0  ;;  %v1650_v57 = vpop.f32.mrf.mxu1 }
 0x257   :  { %v1087_v59 = vadd.f32 %v1640_v51, %v1576_v52  ;;  %1696 = vmatmul.mubr.bf16.gmra.mxu0 %v1156_v54  ;;  %v1145_v43 = vmax.f32 %v1129_v58, 0.0  ;;  %v2265_v52 = vld [vmem:[%s2389_s8] ss:$0 sm:$0xff] }
 0x258   :  { %v1578_v60 = vpop.f32.mrf.mxu0  ;;  %v1651_v1 = vpop.f32.mrf.mxu1 }
 0x259   :  { %v1130_v62 = vadd.f32 %v2238_v0, %v1087_v59  ;;  %v1579_v63 = vadd.f32 %v1578_v60, %v1577_v56  ;;  %v1652_v16 = vadd.f32 %v1651_v1, %v1650_v57 }
 0x25a   :  { %v1580_v39 = vpop.f32.mrf.mxu0  ;;  %v1653_v41 = vpop.f32.mrf.mxu1 }
 0x25b   :  { %v1146_v2 = vmax.f32 %v1130_v62, 0.0  ;;  %v1092_v3 = vadd.f32 %v1643_v61, %v1579_v63 }
 0x25c   :  { %v1581_v4 = vpop.f32.mrf.mxu0  ;;  %v1654_v46 = vpop.f32.mrf.mxu1 }
 0x25d   :  { %v1582_v6 = vadd.f32 %v1581_v4, %v1580_v39  ;;  %v1157_v38 = vpack.c.bf16 %v1146_v2, %v1145_v43  ;;  %v1131_v48 = vadd.f32 %v2238_v0, %v1092_v3  ;;  %v1655_v24 = vadd.f32 %v1654_v46, %v1653_v41 }
 0x25e   :  { %v1583_v7 = vpop.f32.mrf.mxu0  ;;  %v1656_v19 = vpop.f32.mrf.mxu1 }
 0x25f   :  { %v1095_v55 = vadd.f32 %v1646_v5, %v1582_v6  ;;  %1699 = vmatprep.mubr.bf16.mxu0 %v1157_v38  ;;  %v1147_v12 = vmax.f32 %v1131_v48, 0.0 }
 0x260   :  { %v1584_v8 = vpop.f32.mrf.mxu0  ;;  %v1657_v44 = vpop.f32.mrf.mxu1 }
 0x261   :  { %v1132_v10 = vadd.f32 %v2238_v0, %v1095_v55  ;;  %v1585_v11 = vadd.f32 %v1584_v8, %v1583_v7  ;;  %v1658_v31 = vadd.f32 %v1657_v44, %v1656_v19 }
 0x262   :  { %v1586_v53 = vpop.f32.mrf.mxu0 }
 0x263   :  { %v1148_v13 = vmax.f32 %v1132_v10, 0.0  ;;  %v1100_v14 = vadd.f32 %v1649_v9, %v1585_v11 }
 0x264   :  { %v1587_v15 = vpop.f32.mrf.mxu0 }
 0x265   :  { %v1588_v17 = vadd.f32 %v1587_v15, %v1586_v53  ;;  %v1158_v18 = vpack.c.bf16 %v1148_v13, %v1147_v12  ;;  %v1133_v21 = vadd.f32 %v2238_v0, %v1100_v14 }
 0x266   :  { %v1589_v20 = vpop.f32.mrf.mxu0 }
 0x267   :  { %v1103_v22 = vadd.f32 %v1652_v16, %v1588_v17  ;;  %1700 = vmatmul.mubr.bf16.gmra.mxu0 %v1158_v18  ;;  %v1149_v27 = vmax.f32 %v1133_v21, 0.0 }
 0x268   :  { %v1590_v23 = vpop.f32.mrf.mxu0 }
 0x269   :  { %v1134_v25 = vadd.f32 %v2238_v0, %v1103_v22  ;;  %v1591_v26 = vadd.f32 %v1590_v23, %v1589_v20 }
 0x26a   :  { %v1592_v49 = vpop.f32.mrf.mxu0 }
 0x26b   :  { %v1150_v28 = vmax.f32 %v1134_v25, 0.0  ;;  %v1108_v29 = vadd.f32 %v1655_v24, %v1591_v26 }
 0x26c   :  { %v1593_v30 = vpop.f32.mrf.mxu0 }
 0x26d   :  { %v1594_v32 = vadd.f32 %v1593_v30, %v1592_v49  ;;  %v1159_v33 = vpack.c.bf16 %v1150_v28, %v1149_v27  ;;  %v1135_v34 = vadd.f32 %v2238_v0, %v1108_v29 }
 0x26f   :  { %v1111_v35 = vadd.f32 %v1658_v31, %v1594_v32  ;;  %1703 = vmatprep.mubr.bf16.mxu0 %v1159_v33  ;;  %v1151_v37 = vmax.f32 %v1135_v34, 0.0 }
 0x271   :  { %v1136_v36 = vadd.f32 %v2238_v0, %v1111_v35 }
 0x273   :  { %v1152_v40 = vmax.f32 %v1136_v36, 0.0 }
 0x275   :  { %v1160_v42 = vpack.c.bf16 %v1152_v40, %v1151_v37 }
 0x277   :  { %1704 = vmatmul.mubr.bf16.gmra.mxu0 %v1160_v42 }
 0x307   :  { %v1693_v47 = vpop.f32.mrf.mxu0 }
 0x308   :  { %v1275_v50 = vadd.f32 %v1693_v47, %v2259_v45 }
 0x309   :  { %v1266_v51 = vpop.f32.mrf.mxu0 }
 0x30a   :  { %v1331_v54 = vmax.f32 %v1275_v50, 0.0  ;;  %v1267_v0 = vadd.f32 %v2259_v45, %v1266_v51 }
 0x30b   :  { %v1694_v56 = vpop.f32.mrf.mxu0 }
 0x30c   :  { %v1329_v57 = vmax.f32 %v1267_v0, 0.0  ;;  %v1278_v58 = vadd.f32 %v1694_v56, %v2259_v45  ;;  %v1354_v59 = vmul.f32 %v2265_v52, %v1331_v54 }
 0x30d   :  { %v1269_v60 = vpop.f32.mrf.mxu0 }
 0x30e   :  { %v1332_v61 = vmax.f32 %v1278_v58, 0.0  ;;  %v1270_v62 = vadd.f32 %v2259_v45, %v1269_v60  ;;  %v1374_v63 = vsel %vm309_vm2, %v1354_v59, 0.0  ;;  %v1352_v1 = vmul.f32 %v2265_v52, %v1329_v57 }
 0x30f   :  { %1375 = vadd.xlane.f32.xlu0 %v1374_v63 }
 0x310   :  { %v1330_v39 = vmax.f32 %v1270_v62, 0.0  ;;  %v1368_v43 = vsel %vm309_vm2, %v1352_v1, 0.0  ;;  %v1355_v3 = vmul.f32 %v2265_v52, %v1332_v61 }
 0x312   :  { %v1353_v2 = vmul.f32 %v2265_v52, %v1330_v39  ;;  %v1377_v5 = vsel %vm309_vm2, %v1355_v3, 0.0  ;;  %v1417_v3 = vstv %s2390_s9 }
 0x313   :  { %1369 = vadd.xlane.f32.xlu0 %v1368_v43 }
 0x314   :  { %v1371_v4 = vsel %vm309_vm2, %v1353_v2, 0.0 }
 0x315   :  { %1372 = vadd.xlane.f32.xlu1 %v1371_v4 }
 0x317   :  { %v1697_v6 = vpop.f32.mrf.mxu0  ;;  %1378 = vadd.xlane.f32.xlu0 %v1377_v5 }
 0x318   :  { %v1291_v38 = vadd.f32 %v1697_v6, %v2259_v45 }
 0x319   :  { %v1282_v41 = vpop.f32.mrf.mxu0 }
 0x31a   :  { %v1335_v7 = vmax.f32 %v1291_v38, 0.0  ;;  %v1283_v48 = vadd.f32 %v2259_v45, %v1282_v41 }
 0x31b   :  { %v1698_v55 = vpop.f32.mrf.mxu0 }
 0x31c   :  { %v1333_v8 = vmax.f32 %v1283_v48, 0.0  ;;  %v1294_v9 = vadd.f32 %v1698_v55, %v2259_v45  ;;  %v1358_v10 = vmul.f32 %v2265_v52, %v1335_v7 }
 0x31d   :  { %v1285_v11 = vpop.f32.mrf.mxu0 }
 0x31e   :  { %v1336_v46 = vmax.f32 %v1294_v9, 0.0  ;;  %v1286_v53 = vadd.f32 %v2259_v45, %v1285_v11  ;;  %v1386_v12 = vsel %vm309_vm2, %v1358_v10, 0.0  ;;  %v1356_v13 = vmul.f32 %v2265_v52, %v1333_v8 }
 0x31f   :  { %1387 = vadd.xlane.f32.xlu1 %v1386_v12 }
 0x320   :  { %v1334_v14 = vmax.f32 %v1286_v53, 0.0  ;;  %v1359_v15 = vmul.f32 %v2265_v52, %v1336_v46  ;;  %v1380_v16 = vsel %vm309_vm2, %v1356_v13, 0.0 }
 0x322   :  { %v1389_v17 = vsel %vm309_vm2, %v1359_v15, 0.0  ;;  %v1357_v18 = vmul.f32 %v2265_v52, %v1334_v14 }
 0x323   :  { %1381 = vadd.xlane.f32.xlu1 %v1380_v16  ;;  %1390 = vadd.xlane.f32.xlu0 %v1389_v17 }
 0x324   :  { %v1383_v19 = vsel %vm309_vm2, %v1357_v18, 0.0 }
 0x327   :  { %v1701_v20 = vpop.f32.mrf.mxu0  ;;  %1384 = vadd.xlane.f32.xlu0 %v1383_v19 }
 0x328   :  { %v1307_v21 = vadd.f32 %v1701_v20, %v2259_v45 }
 0x329   :  { %v1298_v22 = vpop.f32.mrf.mxu0 }
 0x32a   :  { %v1339_v23 = vmax.f32 %v1307_v21, 0.0  ;;  %v1299_v24 = vadd.f32 %v2259_v45, %v1298_v22 }
 0x32b   :  { %v1702_v25 = vpop.f32.mrf.mxu0 }
 0x32c   :  { %v1337_v26 = vmax.f32 %v1299_v24, 0.0  ;;  %v1310_v44 = vadd.f32 %v1702_v25, %v2259_v45  ;;  %v1362_v49 = vmul.f32 %v2265_v52, %v1339_v23 }
 0x32d   :  { %v1301_v27 = vpop.f32.mrf.mxu0 }
 0x32e   :  { %v1340_v28 = vmax.f32 %v1310_v44, 0.0  ;;  %v1302_v29 = vadd.f32 %v2259_v45, %v1301_v27  ;;  %v1398_v30 = vsel %vm309_vm2, %v1362_v49, 0.0  ;;  %v1360_v31 = vmul.f32 %v2265_v52, %v1337_v26 }
 0x32f   :  { %1399 = vadd.xlane.f32.xlu1 %v1398_v30 }
 0x330   :  { %v1338_v32 = vmax.f32 %v1302_v29, 0.0  ;;  %v1363_v33 = vmul.f32 %v2265_v52, %v1340_v28  ;;  %v1392_v34 = vsel %vm309_vm2, %v1360_v31, 0.0 }
 0x332   :  { %v1401_v35 = vsel %vm309_vm2, %v1363_v33, 0.0  ;;  %v1361_v36 = vmul.f32 %v2265_v52, %v1338_v32 }
 0x333   :  { %1393 = vadd.xlane.f32.xlu1 %v1392_v34  ;;  %1402 = vadd.xlane.f32.xlu0 %v1401_v35 }
 0x334   :  { %v1395_v37 = vsel %vm309_vm2, %v1361_v36, 0.0 }
 0x337   :  { %1396 = vadd.xlane.f32.xlu0 %v1395_v37  ;;  %v1705_v40 = vpop.f32.mrf.mxu0 }
 0x338   :  { %v1323_v42 = vadd.f32 %v1705_v40, %v2259_v45 }
 0x339   :  { %v1314_v47 = vpop.f32.mrf.mxu0 }
 0x33a   :  { %v1315_v50 = vadd.f32 %v2259_v45, %v1314_v47  ;;  %v1343_v54 = vmax.f32 %v1323_v42, 0.0 }
 0x33b   :  { %v1706_v51 = vpop.f32.mrf.mxu0 }
 0x33c   :  { %v1341_v0 = vmax.f32 %v1315_v50, 0.0  ;;  %v1326_v56 = vadd.f32 %v1706_v51, %v2259_v45  ;;  %v1366_v63 = vmul.f32 %v2265_v52, %v1343_v54 }
 0x33d   :  { %v1317_v57 = vpop.f32.mrf.mxu0 }
 0x33e   :  { %v1318_v58 = vadd.f32 %v2259_v45, %v1317_v57  ;;  %v1364_v59 = vmul.f32 %v2265_v52, %v1341_v0  ;;  %v1344_v60 = vmax.f32 %v1326_v56, 0.0  ;;  %v1410_v43 = vsel %vm309_vm2, %v1366_v63, 0.0 }
 0x340   :  { %v1342_v61 = vmax.f32 %v1318_v58, 0.0  ;;  %v1404_v62 = vsel %vm309_vm2, %v1364_v59, 0.0  ;;  %v1367_v2 = vmul.f32 %v2265_v52, %v1344_v60 }
 0x341   :  { %1405 = vadd.xlane.f32.xlu1 %v1404_v62 }
 0x342   :  { %v1365_v1 = vmul.f32 %v2265_v52, %v1342_v61  ;;  %v1413_v45 = vsel %vm309_vm2, %v1367_v2, 0.0 }
 0x344   :  { %v1407_v39 = vsel %vm309_vm2, %v1365_v1, 0.0 }
 0x345   :  { %1408 = vadd.xlane.f32.xlu0 %v1407_v39  ;;  %1411 = vadd.xlane.f32.xlu1 %v1410_v43 }
 0x349   :  { %1414 = vadd.xlane.f32.xlu0 %v1413_v45 }
 0x398   :  { %v1376_v4 = vpop.xlane.xlu0 %1375 }
 0x399   :  { %v1420_v5 = vadd.f32 %v1417_v3, %v1376_v4 }
 0x39b   :  { %1437 = vst.msk [vmem:[%s2391_s10 + $0x10] sm:$0xff] %vm1434_vm3, %v1420_v5 }
 0x39c   :  { %v1370_v6 = vpop.xlane.xlu0 %1369 }
 0x39d   :  { %v1418_v38 = vadd.f32 %v1417_v3, %v1370_v6 }
 0x39e   :  { %v1373_v52 = vpop.xlane.xlu1 %1372 }
 0x39f   :  { %1435 = vst.msk [vmem:[%s2391_s10] sm:$0xff] %vm1434_vm3, %v1418_v38  ;;  %v1419_v41 = vadd.f32 %v1417_v3, %v1373_v52 }
 0x3a0   :  { %v1379_v7 = vpop.xlane.xlu0 %1378 }
 0x3a1   :  { %1436 = vst.msk [vmem:[%s2391_s10 + $0x8] sm:$0xff] %vm1434_vm3, %v1419_v41  ;;  %v1421_v48 = vadd.f32 %v1417_v3, %v1379_v7 }
 0x3a3   :  { %1438 = vst.msk [vmem:[%s2391_s10 + $0x18] sm:$0xff] %vm1434_vm3, %v1421_v48 }
 0x3a8   :  { %v1388_v55 = vpop.xlane.xlu1 %1387 }
 0x3a9   :  { %v1424_v8 = vadd.f32 %v1417_v3, %v1388_v55 }
 0x3ab   :  { %1441 = vst.msk [vmem:[%s2391_s10 + $0x30] sm:$0xff] %vm1434_vm3, %v1424_v8 }
 0x3ac   :  { %v1382_v9 = vpop.xlane.xlu1 %1381  ;;  %v1391_v10 = vpop.xlane.xlu0 %1390 }
 0x3ad   :  { %v1422_v11 = vadd.f32 %v1417_v3, %v1382_v9  ;;  %v1425_v46 = vadd.f32 %v1417_v3, %v1391_v10 }
 0x3af   :  { %1439 = vst.msk [vmem:[%s2391_s10 + $0x20] sm:$0xff] %vm1434_vm3, %v1422_v11  ;;  %1442 = vst.msk [vmem:[%s2391_s10 + $0x38] sm:$0xff] %vm1434_vm3, %v1425_v46 }
 0x3b0   :  { %v1385_v53 = vpop.xlane.xlu0 %1384 }
 0x3b1   :  { %v1423_v12 = vadd.f32 %v1417_v3, %v1385_v53 }
 0x3b3   :  { %1440 = vst.msk [vmem:[%s2391_s10 + $0x28] sm:$0xff] %vm1434_vm3, %v1423_v12 }
 0x3b8   :  { %v1400_v13 = vpop.xlane.xlu1 %1399 }
 0x3b9   :  { %v1428_v14 = vadd.f32 %v1417_v3, %v1400_v13 }
 0x3bb   :  { %1445 = vst.msk [vmem:[%s2391_s10 + $0x50] sm:$0xff] %vm1434_vm3, %v1428_v14 }
 0x3bc   :  { %v1394_v15 = vpop.xlane.xlu1 %1393  ;;  %v1403_v16 = vpop.xlane.xlu0 %1402 }
 0x3bd   :  { %v1426_v17 = vadd.f32 %v1417_v3, %v1394_v15  ;;  %v1429_v18 = vadd.f32 %v1417_v3, %v1403_v16 }
 0x3bf   :  { %1443 = vst.msk [vmem:[%s2391_s10 + $0x40] sm:$0xff] %vm1434_vm3, %v1426_v17  ;;  %1446 = vst.msk [vmem:[%s2391_s10 + $0x58] sm:$0xff] %vm1434_vm3, %v1429_v18 }
 0x3c0   :  { %v1397_v19 = vpop.xlane.xlu0 %1396 }
 0x3c1   :  { %v1427_v20 = vadd.f32 %v1417_v3, %v1397_v19 }
 0x3c3   :  { %1444 = vst.msk [vmem:[%s2391_s10 + $0x48] sm:$0xff] %vm1434_vm3, %v1427_v20 }
 0x3ca   :  { %v1406_v21 = vpop.xlane.xlu1 %1405 }
 0x3cb   :  { %v1430_v22 = vadd.f32 %v1417_v3, %v1406_v21 }
 0x3cd   :  { %1447 = vst.msk [vmem:[%s2391_s10 + $0x60] sm:$0xff] %vm1434_vm3, %v1430_v22 }
 0x3ce   :  { %v1409_v23 = vpop.xlane.xlu0 %1408  ;;  %v1412_v24 = vpop.xlane.xlu1 %1411 }
 0x3cf   :  { %v1431_v25 = vadd.f32 %v1417_v3, %v1409_v23  ;;  %v1432_v26 = vadd.f32 %v1417_v3, %v1412_v24 }
 0x3d1   :  { %1448 = vst.msk [vmem:[%s2391_s10 + $0x68] sm:$0xff] %vm1434_vm3, %v1431_v25  ;;  %1449 = vst.msk [vmem:[%s2391_s10 + $0x70] sm:$0xff] %vm1434_vm3, %v1432_v26 }
 0x3d2   :  { %v1415_v44 = vpop.xlane.xlu0 %1414 }
 0x3d3   :  { %v1433_v49 = vadd.f32 %v1417_v3, %v1415_v44 }
 0x3d5   :  { %1450 = vst.msk [vmem:[%s2391_s10 + $0x78] sm:$0xff] %vm1434_vm3, %v1433_v49 }
 0x3d6   :  { %1455 = vsyncpa [#allocation4], 1 }

</bundles_post_ra>
